<compile_context>
chip_gen: v5e
topology: v5e:2x2
jax: 0.10.0
libtpu: 0.0.40
codegen_flags: <defaults>
</compile_context>

<pallas_src>
from functools import partial

import jax
import jax.numpy as jnp
from jax.experimental import pallas as pl
from jax.experimental.pallas import tpu as pltpu


# ----------------------------------------------------------------------------
# Kernel: TB batch elements per grid step, full (TB, L, Cp) tile in VMEM.
# ----------------------------------------------------------------------------
def _my_layernorm_kernel(x_ref, g_ref, b_ref, out_ref, *, eps, inv_c):
    x = x_ref[...].astype(jnp.float32)                     # (TB, L, Cp)
    g = g_ref[...].astype(jnp.float32)                     # (1, Cp)
    b = b_ref[...].astype(jnp.float32)                     # (1, Cp)

    # Fused single pass over the tile for both stats (lane reduces -> XLU).
    # Padded channels are zero and the denominator uses the true C.
    mu = jnp.sum(x, axis=-1, keepdims=True) * inv_c        # (TB, L, 1)
    ex2 = jnp.sum(x * x, axis=-1, keepdims=True) * inv_c   # E[x^2]
    var = ex2 - mu * mu                                    # biased variance
    inv = jax.lax.rsqrt(var + eps)                         # EUP slot (free-ish)
    x_hat = (x - mu) * inv * g + b                         # affine (padded lanes -> 0)

    # "Seasonal" bias: mean over time, subtracted from every timestep.
    bias = jnp.mean(x_hat, axis=1, keepdims=True)          # (TB, 1, Cp) sublane reduce
    out_ref[...] = (x_hat - bias).astype(out_ref.dtype)


# ----------------------------------------------------------------------------
# Wrapper
# ----------------------------------------------------------------------------
def _choose_tb(B, per_batch_bytes, target_bytes=2 << 20, min_grid=2):
    """Largest divisor of B whose tile fits the byte target, preferring grid >= 2."""
    divs = [d for d in range(1, B + 1) if B % d == 0]
    fits = [d for d in divs if d * per_batch_bytes <= target_bytes] or [1]
    par = [d for d in fits if B // d >= min_grid]
    return max(par) if par else max(fits)


def my_layernorm_forward(x, gamma, beta, *, eps=1e-5):
    """x: (B, L, C); gamma/beta: (C,) LayerNorm affine params."""
    B, L, C = x.shape
    Cp = ((C + 127) // 128) * 128

    g2 = gamma.astype(jnp.float32).reshape(1, C)
    b2 = beta.astype(jnp.float32).reshape(1, C)
    xin = x
    if Cp != C:
        # Keep stores lane-dense; zero-padded gamma/beta make padded outputs 0.
        xin = jnp.pad(x, ((0, 0), (0, 0), (0, Cp - C)))
        g2 = jnp.pad(g2, ((0, 0), (0, Cp - C)))
        b2 = jnp.pad(b2, ((0, 0), (0, Cp - C)))

    itemsize = jnp.dtype(xin.dtype).itemsize
    per_batch_bytes = L * Cp * itemsize
    TB = _choose_tb(B, per_batch_bytes)
    grid = (B // TB,)

    # Double-buffered in + out tiles (+ params & slack); raise scoped VMEM if needed.
    tile_bytes = TB * L * Cp * itemsize
    vmem_needed = 4 * tile_bytes + 2 * Cp * 4 + (1 << 20)
    vmem_limit = min(vmem_needed, 64 << 20) if vmem_needed > (32 << 20) else None

    kernel = partial(_my_layernorm_kernel, eps=float(eps), inv_c=1.0 / float(C))

    out = pl.pallas_call(
        kernel,
        out_shape=jax.ShapeDtypeStruct((B, L, Cp), x.dtype),
        grid_spec=pltpu.PrefetchScalarGridSpec(
            num_scalar_prefetch=0,
            grid=grid,
            in_specs=[
                pl.BlockSpec((TB, L, Cp), lambda bi: (bi, 0, 0)),   # x batch-block
                pl.BlockSpec((1, Cp), lambda bi: (0, 0)),           # gamma (invariant)
                pl.BlockSpec((1, Cp), lambda bi: (0, 0)),           # beta  (invariant)
            ],
            out_specs=pl.BlockSpec((TB, L, Cp), lambda bi: (bi, 0, 0)),
        ),
        compiler_params=pltpu.CompilerParams(
            dimension_semantics=("parallel",),    # megacore-shard the batch blocks
            vmem_limit_bytes=vmem_limit,
        ),
    )(xin, g2, b2)

    if Cp != C:
        out = out[..., :C]
    return out


# ----------------------------------------------------------------------------
# Pure-JAX reference (same math) for correctness checks
# ----------------------------------------------------------------------------
def _reference(x, gamma, beta, eps=1e-5):
    x = x.astype(jnp.float32)
    gamma = gamma.astype(jnp.float32)
    beta = beta.astype(jnp.float32)
    mu = jnp.mean(x, axis=-1, keepdims=True)
    var = jnp.mean((x - mu) ** 2, axis=-1, keepdims=True)
    x_hat = (x - mu) / jnp.sqrt(var + eps) * gamma + beta
    bias = jnp.mean(x_hat, axis=1, keepdims=True)            # mean over time dim
    return x_hat - bias


# ----------------------------------------------------------------------------
if __name__ == "__main__":
    key = jax.random.PRNGKey(0)
    kx, kg, kb, kx2, kg2, kb2 = jax.random.split(key, 6)

    # Test 1: f32, lane-dense channels (C = 128), grid of 2 batch blocks.
    B, L, C = 2, 16, 128
    x = jax.random.normal(kx, (B, L, C), dtype=jnp.float32)
    gamma = 1.0 + 0.1 * jax.random.normal(kg, (C,), dtype=jnp.float32)
    beta = 0.1 * jax.random.normal(kb, (C,), dtype=jnp.float32)

    out = jax.block_until_ready(my_layernorm_forward(x, gamma, beta))
    ref = _reference(x, gamma, beta)
    assert out.shape == (B, L, C)
    assert jnp.allclose(out, ref, atol=5e-4, rtol=5e-4), (
        float(jnp.max(jnp.abs(out - ref))))

    # Test 2: bf16 I/O with f32 compute + channel padding path (C = 96).
    B2, L2, C2 = 4, 16, 96
    x2 = jax.random.normal(kx2, (B2, L2, C2), dtype=jnp.float32).astype(jnp.bfloat16)
    gamma2 = (1.0 + 0.1 * jax.random.normal(kg2, (C2,), dtype=jnp.float32))
    beta2 = 0.1 * jax.random.normal(kb2, (C2,), dtype=jnp.float32)

    out2 = jax.block_until_ready(my_layernorm_forward(x2, gamma2, beta2))
    ref2 = _reference(x2, gamma2, beta2)
    assert out2.shape == (B2, L2, C2)
    assert out2.dtype == jnp.bfloat16
    assert jnp.allclose(out2.astype(jnp.float32), ref2, atol=3e-2, rtol=3e-2), (
        float(jnp.max(jnp.abs(out2.astype(jnp.float32) - ref2))))

    print("KERNEL_OK")
</pallas_src>

<mosaic_0001>
module attributes {stable_mosaic.version = 11 : i64} {
  func.func @_my_layernorm_kernel(%arg0: i32, %arg1: memref<1x16x128xf32, #tpu.memory_space<vmem>>, %arg2: memref<1x128xf32, #tpu.memory_space<vmem>>, %arg3: memref<1x128xf32, #tpu.memory_space<vmem>>, %arg4: memref<1x16x128xf32, #tpu.memory_space<vmem>>) attributes {dimension_semantics = [#tpu.dimension_semantics<parallel>], iteration_bounds = array<i64: 2>, scalar_prefetch = 0 : i64, scratch_operands = 0 : i64, tpu.core_type = #tpu.core_type<tc>, window_params = [{transform_indices = @transform_0, window_bounds = array<i64: 1, 16, 128>}, {pipeline_mode = #tpu.pipeline_mode<synchronous>, transform_indices = @transform_1, window_bounds = array<i64: 1, 128>}, {pipeline_mode = #tpu.pipeline_mode<synchronous>, transform_indices = @transform_2, window_bounds = array<i64: 1, 128>}, {transform_indices = @transform_3, window_bounds = array<i64: 1, 16, 128>}]} {
    %c0 = arith.constant 0 : index
    %c0_0 = arith.constant 0 : index
    %c0_1 = arith.constant 0 : index
    %0 = vector.load %arg1[%c0, %c0_0, %c0_1] : memref<1x16x128xf32, #tpu.memory_space<vmem>>, vector<1x16x128xf32>
    %c0_2 = arith.constant 0 : index
    %c0_3 = arith.constant 0 : index
    %1 = vector.load %arg2[%c0_2, %c0_3] : memref<1x128xf32, #tpu.memory_space<vmem>>, vector<1x128xf32>
    %c0_4 = arith.constant 0 : index
    %c0_5 = arith.constant 0 : index
    %2 = vector.load %arg3[%c0_4, %c0_5] : memref<1x128xf32, #tpu.memory_space<vmem>>, vector<1x128xf32>
    %cst = arith.constant dense<0.000000e+00> : vector<1x16xf32>
    %3 = vector.multi_reduction <add>, %0, %cst [2] : vector<1x16x128xf32> to vector<1x16xf32>
    %4 = vector.shape_cast %3 : vector<1x16xf32> to vector<1x16x1xf32>
    %cst_6 = arith.constant 7.812500e-03 : f32
    %5 = vector.broadcast %cst_6 : f32 to vector<1x16x1xf32>
    %6 = arith.mulf %4, %5 : vector<1x16x1xf32>
    %7 = arith.mulf %0, %0 : vector<1x16x128xf32>
    %cst_7 = arith.constant dense<0.000000e+00> : vector<1x16xf32>
    %8 = vector.multi_reduction <add>, %7, %cst_7 [2] : vector<1x16x128xf32> to vector<1x16xf32>
    %9 = vector.shape_cast %8 : vector<1x16xf32> to vector<1x16x1xf32>
    %cst_8 = arith.constant 7.812500e-03 : f32
    %10 = vector.broadcast %cst_8 : f32 to vector<1x16x1xf32>
    %11 = arith.mulf %9, %10 : vector<1x16x1xf32>
    %12 = arith.mulf %6, %6 : vector<1x16x1xf32>
    %13 = arith.subf %11, %12 : vector<1x16x1xf32>
    %cst_9 = arith.constant 9.99999974E-6 : f32
    %14 = vector.broadcast %cst_9 : f32 to vector<1x16x1xf32>
    %15 = arith.addf %13, %14 : vector<1x16x1xf32>
    %16 = math.rsqrt %15 : vector<1x16x1xf32>
    %17 = vector.broadcast %6 : vector<1x16x1xf32> to vector<1x16x128xf32>
    %18 = arith.subf %0, %17 : vector<1x16x128xf32>
    %19 = vector.broadcast %16 : vector<1x16x1xf32> to vector<1x16x128xf32>
    %20 = arith.mulf %18, %19 : vector<1x16x128xf32>
    %21 = vector.shape_cast %1 : vector<1x128xf32> to vector<1x1x128xf32>
    %22 = vector.broadcast %21 : vector<1x1x128xf32> to vector<1x16x128xf32>
    %23 = arith.mulf %20, %22 : vector<1x16x128xf32>
    %24 = vector.shape_cast %2 : vector<1x128xf32> to vector<1x1x128xf32>
    %25 = vector.broadcast %24 : vector<1x1x128xf32> to vector<1x16x128xf32>
    %26 = arith.addf %23, %25 : vector<1x16x128xf32>
    %cst_10 = arith.constant dense<0.000000e+00> : vector<1x128xf32>
    %27 = vector.multi_reduction <add>, %26, %cst_10 [1] : vector<1x16x128xf32> to vector<1x128xf32>
    %28 = vector.shape_cast %27 : vector<1x128xf32> to vector<1x1x128xf32>
    %cst_11 = arith.constant 1.600000e+01 : f32
    %29 = vector.broadcast %cst_11 : f32 to vector<1x1x128xf32>
    %30 = arith.divf %28, %29 : vector<1x1x128xf32>
    %31 = vector.broadcast %30 : vector<1x1x128xf32> to vector<1x16x128xf32>
    %32 = arith.subf %26, %31 : vector<1x16x128xf32>
    %c0_12 = arith.constant 0 : index
    %c0_13 = arith.constant 0 : index
    %c0_14 = arith.constant 0 : index
    %33 = vector.load %arg4[%c0_12, %c0_13, %c0_14] : memref<1x16x128xf32, #tpu.memory_space<vmem>>, vector<1x16x128xf32>
    tpu.vector_store %arg4[%c0_12, %c0_13, %c0_14], %32 {strides = array<i32>} : memref<1x16x128xf32, #tpu.memory_space<vmem>>, vector<1x16x128xf32>,
    return
  }
  func.func @transform_0(%arg0: i32) -> (i32, i32, i32) {
    %c0_i32 = arith.constant 0 : i32
    %c0_i32_0 = arith.constant 0 : i32
    %c0_i32_1 = arith.constant 0 : i32
    return %arg0, %c0_i32, %c0_i32_0 : i32, i32, i32
  }
  func.func @transform_1(%arg0: i32) -> (i32, i32) {
    %c0_i32 = arith.constant 0 : i32
    %c0_i32_0 = arith.constant 0 : i32
    %c0_i32_1 = arith.constant 0 : i32
    return %c0_i32, %c0_i32_0 : i32, i32
  }
  func.func @transform_2(%arg0: i32) -> (i32, i32) {
    %c0_i32 = arith.constant 0 : i32
    %c0_i32_0 = arith.constant 0 : i32
    %c0_i32_1 = arith.constant 0 : i32
    return %c0_i32, %c0_i32_0 : i32, i32
  }
  func.func @transform_3(%arg0: i32) -> (i32, i32, i32) {
    %c0_i32 = arith.constant 0 : i32
    %c0_i32_0 = arith.constant 0 : i32
    %c0_i32_1 = arith.constant 0 : i32
    return %arg0, %c0_i32, %c0_i32_0 : i32, i32, i32
  }
}

</mosaic_0001>

<bundles_post_ra>
// kernel: tpu_custom_call.1
= control target key start
LH: loop header
LB: loop body
LE: loop exit
PB: predicated region body
PF: predicated region fallthrough
CT: control target
= control target key end

     0   :  { %8 = vsyncpa [#allocation3], 0  ;;  %s777_s0 = inlined_call_operand.hbm [shape: f32[2,16,128], index: 0, kind: input, shape index: {}]   ;;  %s778_s1 = inlined_call_operand.hbm [shape: f32[1,128], index: 1, kind: input, shape index: {}]   ;;  %s779_s2 = inlined_call_operand.vmem [shape: f32[1,128], index: 2, kind: input, shape index: {}]   ;;  %s780_s3 = inlined_call_operand.hbm [shape: f32[2,16,128], index: 3, kind: output, shape index: {}]  }
   0x1   :  { %10 = vsyncpa [#allocation3 + $0x1], 0 }
   0x2   :  { %11 = vsyncpa [#allocation6], 0 }
   0x3   :  { %12 = vsyncpa [#allocation4], 0 }
   0x4   :  { %14 = vsyncpa [#allocation4 + $0x1], 0  ;;  %s628_s12 = smov 0   ;;  %s630_s13 = smov 0  }
   0x5   :  { %s632_s14 = smov 0   ;;  %s634_s15 = smov 0  }
   0x6 LB: > { %s649_s16 = sadd.s32 4294967295, %s600_s15   ;;  %s382_s17 = sadd.s32 4294967294, %s600_s15   ;;  %s600_s15 = sphi %s634_s15, %s791_s15   ;;  %s596_s14 = sphi %s632_s14, %s790_s14   ;;  %s592_s13 = sphi %s630_s13, %s789_s13   ;;  %s588_s12 = sphi %s628_s12, %s788_s12  }
   0x7   : > { %s653_s18 = sadd.s32 1, %s600_s15   ;;  %s27_s19 = sadd.s32 1, %s596_s14 }
   0x8   : > { %s24_s20 = ssub.s32 %s600_s15, %s653_s18  ;;  %p34_p0 = scmp.ne.s32.totalorder %s596_s14, %s592_s13 }
   0x9   : > { %p25_p1 = scmp.eq.s32.totalorder %s24_s20, 0  ;;  %p35_p2 = scmp.eq.s32.totalorder %s600_s15, 0 }
   0xa   : > { %p40_p3 = scmp.ne.s32.totalorder %s592_s13, %s588_s12  ;;  %p41_p4 = scmp.eq.s32.totalorder %s649_s16, 0 }
   0xb   : > { %s665_s21 = scalar_select %p25_p1, %s596_s14, %s27_s19  }
   0xc   : > { %p667_p5 = por %p35_p2, %p34_p0  ;;  %p673_p6 = por %p41_p4, %p40_p3 }
   0xd   : > { %p106_p7 = scmp.eq.s32.totalorder %s649_s16, 1  ;;  %p112_p8 = scmp.eq.s32.totalorder %s382_s17, 1 }
   0xe   : > { %p383_p9 = scmp.ge.s32.totalorder %s600_s15, 1  ;;  %p119_p10 = scmp.lt.s32.totalorder %s600_s15, 3 }
   0xf   : > { %p680_p11 = por %p106_p7, %p34_p0  ;;  %p684_p12 = por %p112_p8, %p40_p3 }
  0x10   : > { %p688_p13 = pnand %p383_p9, %p119_p10  ;;  %s131_s29 = sshll.u32 %s778_s1, 4  ;;  %s132_s29 = int_to_ptr.hbm [resolvable:$true] %s131_s29 }
  0x11   : > { %s602_s30 = smov [#allocation5]   ;;  %p421_p3 = scmp.lt.s32.totalorder %s600_s15, 2 }
  0x12   : > { %p408_p1 = pneg %p688_p13  ;;  %s133_s4 = sshll.u32 %s602_s30, 4  ;;  %s134_s4 = int_to_ptr.vmem [resolvable:$true] %s133_s4 }
  0x13   : > { %s147_s5 = sand.u32 1, %s596_s14   ;;  %p704_p7 = pnand %p421_p3, %p667_p5 }
  0x14   : > { %p409_p2 = pnand %p408_p1, %p41_p4  ;;  %s386_s7 = sshll.u32 %s147_s5, 4 }
  0x15   : > { %s398_s8 = sshll.u32 %s600_s15, 4  ;;  %s151_s19 = scalar_lea.vmem [#allocation2], %s386_s7 }
  0x16   : > { %411 = dma.hbm_to_vmem [thread:$0]  (!%p409_p2), %s132_s29, 16, %s134_s4, [#allocation6]  }
  0x17   : > { %s156_s11 = scalar_lea.hbm %s777_s0, %s398_s8  ;;  %s159_s20 = sshll.u32 %s151_s19, 4  ;;  %s160_s20 = int_to_ptr.vmem [resolvable:$true] %s159_s20 }
  0x18   : > { %s157_s17 = sshll.u32 %s156_s11, 4  ;;  %s148_s27 = scalar_lea.sflag [#allocation3], %s147_s5  ;;  %s158_s17 = int_to_ptr.hbm [resolvable:$true] %s157_s17 }
  0x19   : > { %s500_s28 = sshra.s32 %s158_s17, 4  ;;  %p504_p8 = pneg %p704_p7  ;;  %s501_s28 = int_to_ptr.hbm [resolvable:$true] %s500_s28 }
  0x1a   : > { %s502_s22 = scalar_lea.hbm %s501_s28, 16  ;;  %s507_s4 = scalar_lea.hbm %s777_s0, 32 }
  0x1b   : > { %p503_p5 = scmp.ne.s32.totalorder %s501_s28, %s502_s22  ;;  %p508_p1 = scmp.lt.s32.totalorder %s501_s28, %s777_s0 }
  0x1c   : > { %p509_p2 = scmp.lt.s32.totalorder %s507_s4, %s502_s22 }
  0x1d   : > { %p505_p9 = pnand %p504_p8, %p503_p5 }
  0x1e   : > { %p510_p3 = por %p509_p2, %p508_p1 }
  0x1f   : > { %p506_p10 = pneg %p505_p9 }
  0x21   : > { %p511_p0 = pnand %p510_p3, %p506_p10 }
  0x23   : > { %514 = shalt.err (!%p511_p0)
}
  0x24   : > { %s603_s5 = smov 128   ;;  %s604_s7 = smov 8  }
  0x25   : > { %415 = dma.hbm_to_vmem [thread:$0]  (!%p704_p7), %s158_s17, 256, %s160_s20, %s148_s27, %s603_s5, %s603_s5, %s604_s7  }
  0x26   : > { %171 = sbr.rel (%p688_p13) target bundleno = 226 (0xe2), region = 32  ;;  %s725_s10 = sand.u32 (!%p688_p13), 1, %s592_s13  }
  0x27   : > { %s390_s11 = sshll.u32 (!%p688_p13), %s725_s10, 4  ;;  %s174_s19 = scalar_lea.sflag (!%p688_p13), [#allocation3], %s725_s10 }
  0x28   : > { %s177_s28 = scalar_lea.vmem (!%p688_p13), [#allocation2], %s390_s11 }
  0x2b   : > { %575 = dma.done.wait (%p673_p6), %s174_s19, 256  }
  0x2c   : > { %577 = vsyncadd (%p673_p6), %s174_s19, 4294967040 }
  0x2d   : > { %579 = dma.done.wait (%p41_p4), [#allocation6], 16  }
  0x2e   : > { %581 = vsyncadd (%p41_p4), [#allocation6], 4294967280  ;;  %v206_v0 = vld [vmem:[%s177_s28] sm:$0xff]  ;;  %v207_v2 = vld [vmem:[%s177_s28 + $0x8] sm:$0xff]  ;;  %v605_v27 = vmov 16.0   ;;  %s399_s6 = sshll.u32 %s649_s16, 4 }
  0x2f   : > { %210 = vadd.xlane.f32.xlu0 %v206_v0  ;;  %v216_v1 = vmul.f32 %v206_v0, %v206_v0  ;;  %v217_v3 = vmul.f32 %v207_v2, %v207_v2  ;;  %v462_v32 = vld [vmem:[#allocation5] ss:$0 sm:$0xff]  ;;  %s295_s27 = scalar_lea.hbm %s780_s3, %s399_s6  ;;  %s205_s22 = scalar_lea.vmem [#allocation7], %s390_s11 }
  0x30   : > { %v463_v38 = vld [vmem:[%s779_s2] ss:$0 sm:$0xff]  ;;  %s296_s29 = sshll.u32 %s205_s22, 4  ;;  %s298_s30 = sshll.u32 %s295_s27, 4  ;;  %s297_s29 = int_to_ptr.vmem [resolvable:$true] %s296_s29  ;;  %s299_s30 = int_to_ptr.hbm [resolvable:$true] %s298_s30 }
  0x31   : > { %218 = vadd.xlane.f32.xlu1 %v216_v1  ;;  %s284_s16 = scalar_lea.sflag [#allocation4], %s725_s10  ;;  %s544_s4 = sshra.s32 %s299_s30, 4  ;;  %s545_s4 = int_to_ptr.hbm [resolvable:$true] %s544_s4 }
  0x32   : > { %s546_s9 = scalar_lea.hbm %s545_s4, 16  ;;  %s550_s7 = scalar_lea.hbm %s780_s3, 32 }
  0x33   : > { %p547_p4 = scmp.ne.s32.totalorder %s545_s4, %s546_s9  ;;  %p551_p0 = scmp.lt.s32.totalorder %s545_s4, %s780_s3 }
  0x34   : > { %p552_p7 = scmp.lt.s32.totalorder %s550_s7, %s546_s9 }
  0x35   : > { %p548_p6 = pnand %p547_p4, %p680_p11 }
  0x36   : > { %p553_p5 = por %p552_p7, %p551_p0 }
  0x37   : > { %212 = vadd.xlane.f32.xlu0 %v207_v2  ;;  %p549_p13 = pneg %p548_p6 }
  0x39   : > { %220 = vadd.xlane.f32.xlu1 %v217_v3  ;;  %p554_p8 = pnand %p553_p5, %p549_p13 }
  0xa2   : > { %v211_v4 = vpop.xlane.xlu0 %210 }
  0xa3   : > { %v214_v5 = vmul.f32 0.0078125, %v211_v4 }
  0xa4   : > { %v219_v6 = vpop.xlane.xlu1 %218 }
  0xa5   : > { %v224_v7 = vmul.f32 %v214_v5, %v214_v5  ;;  %v222_v8 = vmul.f32 0.0078125, %v219_v6  ;;  %v250_v30 = vsub.f32 %v206_v0, %v214_v5 }
  0xa7   : > { %v226_v9 = vsub.f32 %v222_v8, %v224_v7 }
  0xa9   : > { %v228_v10 = vadd.f32 1e-05, %v226_v9 }
  0xaa   : > { %v213_v11 = vpop.xlane.xlu0 %212 }
  0xab   : > { %464 = vrsqrt.f32 %v228_v10  ;;  %v215_v12 = vmul.f32 0.0078125, %v213_v11  ;;  %vm236_vm1 = vweird.f32 %v228_v10 }
  0xac   : > { %v221_v13 = vpop.xlane.xlu1 %220 }
  0xad   : > { %v225_v14 = vmul.f32 %v215_v12, %v215_v12  ;;  %v223_v15 = vmul.f32 0.0078125, %v221_v13  ;;  %v251_v36 = vsub.f32 %v207_v2, %v215_v12 }
  0xaf   : > { %v227_v16 = vsub.f32 %v223_v15, %v225_v14 }
  0xb1   : > { %v465_v17 = vpop.eup %464  ;;  %v229_v18 = vadd.f32 1e-05, %v227_v16 }
  0xb2   : > { %v231_v19 = vmul.f32 %v465_v17, %v228_v10  ;;  %vm237_vm0 = vweird.f32 %v465_v17 }
  0xb3   : > { %466 = vrsqrt.f32 %v229_v18  ;;  %vm238_vm2 = vmor %vm236_vm1, %vm237_vm0  ;;  %vm246_vm4 = vweird.f32 %v229_v18 }
  0xb4   : > { %v232_v20 = vmul.f32 %v465_v17, %v231_v19  ;;  %468 = vrcp.f32 %v605_v27 }
  0xb6   : > { %v233_v21 = vmul.f32 0.5, %v232_v20 }
  0xb8   : > { %v234_v22 = vsub.f32 1.5, %v233_v21 }
  0xb9   : > { %v467_v23 = vpop.eup %466 }
  0xba   : > { %v235_v24 = vmul.f32 %v465_v17, %v234_v22  ;;  %v241_v25 = vmul.f32 %v467_v23, %v229_v18  ;;  %vm247_vm3 = vweird.f32 %v467_v23  ;;  %v469_v35 = vpop.eup %468 }
  0xbb   : > { %vm248_vm5 = vmor %vm246_vm4, %vm247_vm3  ;;  %v272_v41 = vmul.f32 16.0, %v469_v35  ;;  %vm276_vm6 = vweird.f32 %v469_v35 }
  0xbc   : > { %v242_v26 = vmul.f32 %v467_v23, %v241_v25  ;;  %v239_v28 = vsel %vm238_vm2, %v465_v17, %v235_v24 }
  0xbd   : > { %v252_v33 = vmul.f32 %v250_v30, %v239_v28  ;;  %v273_v45 = vsub.f32 1.0, %v272_v41 }
  0xbe   : > { %v243_v29 = vmul.f32 0.5, %v242_v26 }
  0xbf   : > { %v257_v39 = vmul.f32 %v462_v32, %v252_v33  ;;  %v274_v48 = vmul.f32 %v469_v35, %v273_v45 }
  0xc0   : > { %v244_v31 = vsub.f32 1.5, %v243_v29 }
  0xc1   : > { %v262_v43 = vadd.f32 %v463_v38, %v257_v39  ;;  %v275_v51 = vadd.f32 %v469_v35, %v274_v48 }
  0xc2   : > { %v245_v34 = vmul.f32 %v467_v23, %v244_v31 }
  0xc3   : > { %v277_v54 = vsel %vm276_vm6, %v469_v35, %v275_v51 }
  0xc4   : > { %v249_v37 = vsel %vm248_vm5, %v467_v23, %v245_v34 }
  0xc5   : > { %v253_v40 = vmul.f32 %v251_v36, %v249_v37 }
  0xc7   : > { %v258_v42 = vmul.f32 %v462_v32, %v253_v40 }
  0xc9   : > { %v263_v44 = vadd.f32 %v463_v38, %v258_v42 }
  0xcb   : > { %v264_v46 = vadd.f32 %v263_v44, %v262_v43 }
  0xcd   : > { %v265_v47 = vrot.slane %v264_v46, 4 }
  0xcf   : > { %v266_v49 = vadd.f32 %v265_v47, %v264_v46 }
  0xd1   : > { %v267_v50 = vrot.slane %v266_v49, 2 }
  0xd3   : > { %v268_v52 = vadd.f32 %v267_v50, %v266_v49 }
  0xd5   : > { %v269_v53 = vrot.slane %v268_v52, 1 }
  0xd7   : > { %v270_v55 = vadd.f32 %v269_v53, %v268_v52 }
  0xd9   : > { %v278_v56 = vmul.f32 %v277_v54, %v270_v55 }
  0xdb   : > { %v280_v57 = vsub.f32 %v263_v44, %v278_v56  ;;  %v279_v58 = vsub.f32 %v262_v43, %v278_v56 }
  0xdd   : > { %281 = vst [vmem:[%s205_s22] sm:$0xff] %v279_v58 }
  0xde   : > { %282 = vst [vmem:[%s205_s22 + $0x8] sm:$0xff] %v280_v57 }
  0xdf   : > { %557 = shalt.err (!%p554_p8)
}
  0xe0   : > { %s606_s10 = smov 128   ;;  %s607_s28 = smov 8  }
  0xe1   : > { %406 = dma.vmem_to_hbm [thread:$0]  (%p680_p11), %s297_s29, 256, %s299_s30, %s284_s16, %s606_s10, %s606_s10, %s607_s28  }
  0xe2 PF: > { %s313_s23 = sand.u32 1, %s588_s12   ;;  %p787_p9 = scmp.ge.s32.totalorder %s600_s15, 2 }
  0xe3   : > { %s314_s26 = scalar_lea.sflag [#allocation4], %s313_s23 }
  0xe4   : > { %p417_p10 = pnand %p787_p9, %p684_p12 }
  0xe6   : > { %p418_p1 = pneg %p417_p10 }
  0xe8   : > { %583 = dma.done.wait (%p418_p1), %s314_s26, 256  }
  0xe9   : > { %585 = vsyncadd (%p418_p1), %s314_s26, 4294967040  ;;  %p17_p2 = scmp.ge.s32.totalorder %s653_s18, 4   ;;  %s788_s12 = smov %s592_s13 }
  0xea   : > { %s789_s13 = smov %s596_s14  ;;  %s790_s14 = smov %s665_s21 }
  0xeb   : > { %s791_s15 = smov %s653_s18  ;;  %19 = sbr.rel (!%p17_p2) target bundleno = 6 (0x6), region = 81 }
  0xf0   :  { %320 = vsyncpa [#allocation3], 1 }
  0xf1   :  { %322 = vsyncpa [#allocation3 + $0x1], 1 }
  0xf2   :  { %323 = vsyncpa [#allocation6], 1 }
  0xf3   :  { %324 = vsyncpa [#allocation4], 1 }
  0xf4   :  { %326 = vsyncpa [#allocation4 + $0x1], 1 }

</bundles_post_ra>
